<compile_context>
chip_gen: v5e
topology: v5e:2x2
jax: 0.10.0
libtpu: 0.0.40
codegen_flags: <defaults>
</compile_context>

<pallas_src>
import functools

import jax
import jax.numpy as jnp
from jax import lax
from jax.experimental import pallas as pl
from jax.experimental.pallas import tpu as pltpu


def _semi_gcn_kernel(x_ref, w_ref, idx_ref, bias_ref, out_ref, y_ref, *,
                     k, cin, tile_n):
    # x_ref:    (1, Cin, N)        f32   (full x for this batch element)
    # w_ref:    (Cout, Cin)        f32   (conv weight, channels-first)
    # idx_ref:  (1, 1, k*tile_n)   i32   (neighbour idx, j-major per tile)
    # bias_ref: (Cout, 1)          f32
    # out_ref:  (1, Cout, tile_n)  f32
    # y_ref:    (Cout, N)          bf16  VMEM scratch (relu(Wx) for this batch)
    t = pl.program_id(1)
    n_src = y_ref.shape[1]

    @pl.when(t == 0)
    def _compute_y():
        x = x_ref[0]          # [Cin, N]
        w = w_ref[...]        # [Cout, Cin]
        if cin <= 16:
            # Tiny contraction depth: unrolled VPU broadcast-FMA beats a
            # near-idle MXU push.
            acc = w[:, 0:1] * x[0:1, :]                      # [Cout, N]
            for c in range(1, cin):
                acc = acc + w[:, c:c + 1] * x[c:c + 1, :]
        else:
            acc = jnp.dot(w.astype(jnp.bfloat16), x.astype(jnp.bfloat16),
                          preferred_element_type=jnp.float32)
        y_ref[...] = jnp.maximum(acc, 0.0).astype(jnp.bfloat16)

    # Fused gather: one bf16 one-hot matmul for all k neighbours of this tile.
    idx_flat = idx_ref[0]                                     # [1, k*tile_n]
    row_ids = lax.broadcasted_iota(jnp.int32, (n_src, k * tile_n), 0)
    onehot = (row_ids == idx_flat).astype(jnp.bfloat16)       # [N, k*tile_n]
    gathered = jnp.dot(y_ref[...], onehot,
                       preferred_element_type=jnp.float32)    # [Cout, k*tile_n]

    # Max over the k neighbours (static lane slices), 1/k hoisted out.
    acc = gathered[:, 0:tile_n]
    for j in range(1, k):
        acc = jnp.maximum(acc, gathered[:, j * tile_n:(j + 1) * tile_n])

    out_ref[0] = acc * (1.0 / k) + bias_ref[...]              # bias [Cout,1]


def _pick_tile_n(n):
    if n <= 512:
        return n
    for t in (512, 384, 256, 128):
        if n % t == 0:
            return t
    return n


def semi_gcn_conv2d(x_nchw, edge_index, weight, bias):
    """x_nchw: [B, Cin, N, 1]; edge_index: [2, B, N, k] int;
    weight: [Cout, Cin] (== PyTorch Conv2d weight[:, :, 0, 0]); bias: [Cout].
    Returns [B, Cout, N, 1]."""
    B, Cin, N, W1 = x_nchw.shape
    assert W1 == 1
    k = edge_index.shape[-1]
    Cout = weight.shape[0]

    tile_n = _pick_tile_n(N)
    T = N // tile_n
    assert T * tile_n == N

    x = x_nchw[..., 0].astype(jnp.float32)                    # [B, Cin, N]
    idx = edge_index[0].astype(jnp.int32)                     # [B, N, k]
    # Pre-flatten idx so each N-tile's neighbours are contiguous, j-major:
    # idx_flat[b, 0, t*k*tile_n + j*tile_n + nl] = idx[b, t*tile_n + nl, j]
    idx_t = jnp.transpose(idx, (0, 2, 1)).reshape(B, k, T, tile_n)
    idx_flat = jnp.transpose(idx_t, (0, 2, 1, 3)).reshape(B, 1, T * k * tile_n)
    w = weight.astype(jnp.float32)                            # [Cout, Cin]
    bias2d = bias.reshape(Cout, 1).astype(jnp.float32)

    kernel = functools.partial(_semi_gcn_kernel, k=k, cin=Cin, tile_n=tile_n)
    out = pl.pallas_call(
        kernel,
        out_shape=jax.ShapeDtypeStruct((B, Cout, N), jnp.float32),
        grid_spec=pltpu.PrefetchScalarGridSpec(
            num_scalar_prefetch=0,
            grid=(B, T),
            in_specs=[
                pl.BlockSpec((1, Cin, N), lambda b, t: (b, 0, 0)),
                pl.BlockSpec((Cout, Cin), lambda b, t: (0, 0)),
                pl.BlockSpec((1, 1, k * tile_n), lambda b, t: (b, 0, t)),
                pl.BlockSpec((Cout, 1), lambda b, t: (0, 0)),
            ],
            out_specs=pl.BlockSpec((1, Cout, tile_n), lambda b, t: (b, 0, t)),
            scratch_shapes=[pltpu.VMEM((Cout, N), jnp.bfloat16)],
        ),
        compiler_params=pltpu.CompilerParams(
            dimension_semantics=("parallel", "arbitrary"),
            vmem_limit_bytes=48 * 1024 * 1024,
        ),
    )(x, w, idx_flat, bias2d)

    return out[..., None]                                     # [B, Cout, N, 1]


def _reference(x_nchw, edge_index, weight, bias):
    """Pure-JAX f32 reference of the same forward (aggr='max')."""
    k = edge_index.shape[-1]
    x = x_nchw[..., 0]                                        # [B, Cin, N]
    y = jax.nn.relu(jnp.einsum("oc,bcn->bon", weight, x))     # [B, Cout, N]
    idx = edge_index[0]                                       # [B, N, k]
    gathered = jax.vmap(lambda yb, ib: yb[:, ib])(y, idx)     # [B, Cout, N, k]
    x_j = gathered * (1.0 / k)
    aggr = jnp.max(x_j, axis=-1, keepdims=True)               # [B, Cout, N, 1]
    return aggr + bias.reshape(1, -1, 1, 1)


if __name__ == "__main__":
    B, Cin, Cout, N, k = 2, 4, 8, 16, 8

    key = jax.random.PRNGKey(0)
    kx, kw, ki = jax.random.split(key, 3)

    x = jax.random.normal(kx, (B, Cin, N, 1), dtype=jnp.float32)
    # Conv2d(Cin, Cout, 1, bias=False) weight, stored channels-first [Cout, Cin]
    weight = jax.random.normal(kw, (Cout, Cin), dtype=jnp.float32) / jnp.sqrt(
        jnp.float32(Cin)
    )
    # self.bias is a (1, Cout, 1, 1) parameter zeroed by reset_parameters()
    bias = jnp.zeros((Cout,), dtype=jnp.float32)
    # edge_index: [2, B, N, k]; forward only reads edge_index[0]
    edge_index = jax.random.randint(ki, (2, B, N, k), 0, N, dtype=jnp.int32)

    out = semi_gcn_conv2d(x, edge_index, weight, bias)
    jax.block_until_ready(out)

    ref = _reference(x, edge_index, weight, bias)
    assert out.shape == (B, Cout, N, 1), out.shape
    # bf16 MXU operands (y stored bf16, f32 accumulation) -> loosened tolerance
    # versus the pure-f32 reference.
    assert jnp.allclose(out, ref, atol=2e-2, rtol=2e-2), float(
        jnp.max(jnp.abs(out - ref))
    )
    print("KERNEL_OK")
</pallas_src>

<mosaic_0001>
module attributes {stable_mosaic.version = 11 : i64} {
  func.func @_semi_gcn_kernel(%arg0: i32, %arg1: i32, %arg2: memref<1x4x16xf32, #tpu.memory_space<vmem>>, %arg3: memref<8x4xf32, #tpu.memory_space<vmem>>, %arg4: memref<1x1x128xi32, #tpu.memory_space<vmem>>, %arg5: memref<8x1xf32, #tpu.memory_space<vmem>>, %arg6: memref<1x8x16xf32, #tpu.memory_space<vmem>>, %arg7: memref<8x16xbf16, #tpu.memory_space<vmem>>) attributes {dimension_semantics = [#tpu.dimension_semantics<parallel>, #tpu.dimension_semantics<arbitrary>], iteration_bounds = array<i64: 2, 1>, scalar_prefetch = 0 : i64, scratch_operands = 1 : i64, tpu.core_type = #tpu.core_type<tc>, window_params = [{transform_indices = @transform_0, window_bounds = array<i64: 1, 4, 16>}, {pipeline_mode = #tpu.pipeline_mode<synchronous>, transform_indices = @transform_1, window_bounds = array<i64: 8, 4>}, {transform_indices = @transform_2, window_bounds = array<i64: 1, 1, 128>}, {pipeline_mode = #tpu.pipeline_mode<synchronous>, transform_indices = @transform_3, window_bounds = array<i64: 8, 1>}, {transform_indices = @transform_4, window_bounds = array<i64: 1, 8, 16>}]} {
    %c0_i32 = arith.constant 0 : i32
    %0 = arith.cmpi eq, %arg1, %c0_i32 : i32
    %1 = arith.extui %0 : i1 to i32
    %c0_i32_0 = arith.constant 0 : i32
    %2 = arith.cmpi ne, %1, %c0_i32_0 : i32
    scf.if %2 {
      %c0_11 = arith.constant 0 : index
      %c0_12 = arith.constant 0 : index
      %c0_13 = arith.constant 0 : index
      %36 = vector.load %arg2[%c0_11, %c0_12, %c0_13] : memref<1x4x16xf32, #tpu.memory_space<vmem>>, vector<1x4x16xf32>
      %37 = vector.shape_cast %36 : vector<1x4x16xf32> to vector<4x16xf32>
      %c0_14 = arith.constant 0 : index
      %c0_15 = arith.constant 0 : index
      %38 = vector.load %arg3[%c0_14, %c0_15] : memref<8x4xf32, #tpu.memory_space<vmem>>, vector<8x4xf32>
      %39 = vector.extract_strided_slice %38 {offsets = [0, 0], sizes = [8, 1], strides = [1, 1]} : vector<8x4xf32> to vector<8x1xf32>
      %40 = vector.extract_strided_slice %37 {offsets = [0, 0], sizes = [1, 16], strides = [1, 1]} : vector<4x16xf32> to vector<1x16xf32>
      %41 = vector.broadcast %39 : vector<8x1xf32> to vector<8x16xf32>
      %42 = vector.broadcast %40 : vector<1x16xf32> to vector<8x16xf32>
      %43 = arith.mulf %41, %42 : vector<8x16xf32>
      %44 = vector.extract_strided_slice %38 {offsets = [0, 1], sizes = [8, 1], strides = [1, 1]} : vector<8x4xf32> to vector<8x1xf32>
      %45 = vector.extract_strided_slice %37 {offsets = [1, 0], sizes = [1, 16], strides = [1, 1]} : vector<4x16xf32> to vector<1x16xf32>
      %46 = vector.broadcast %44 : vector<8x1xf32> to vector<8x16xf32>
      %47 = vector.broadcast %45 : vector<1x16xf32> to vector<8x16xf32>
      %48 = arith.mulf %46, %47 : vector<8x16xf32>
      %49 = arith.addf %43, %48 : vector<8x16xf32>
      %50 = vector.extract_strided_slice %38 {offsets = [0, 2], sizes = [8, 1], strides = [1, 1]} : vector<8x4xf32> to vector<8x1xf32>
      %51 = vector.extract_strided_slice %37 {offsets = [2, 0], sizes = [1, 16], strides = [1, 1]} : vector<4x16xf32> to vector<1x16xf32>
      %52 = vector.broadcast %50 : vector<8x1xf32> to vector<8x16xf32>
      %53 = vector.broadcast %51 : vector<1x16xf32> to vector<8x16xf32>
      %54 = arith.mulf %52, %53 : vector<8x16xf32>
      %55 = arith.addf %49, %54 : vector<8x16xf32>
      %56 = vector.extract_strided_slice %38 {offsets = [0, 3], sizes = [8, 1], strides = [1, 1]} : vector<8x4xf32> to vector<8x1xf32>
      %57 = vector.extract_strided_slice %37 {offsets = [3, 0], sizes = [1, 16], strides = [1, 1]} : vector<4x16xf32> to vector<1x16xf32>
      %58 = vector.broadcast %56 : vector<8x1xf32> to vector<8x16xf32>
      %59 = vector.broadcast %57 : vector<1x16xf32> to vector<8x16xf32>
      %60 = arith.mulf %58, %59 : vector<8x16xf32>
      %61 = arith.addf %55, %60 : vector<8x16xf32>
      %cst_16 = arith.constant 0.000000e+00 : f32
      %62 = vector.broadcast %cst_16 : f32 to vector<8x16xf32>
      %63 = arith.maximumf %61, %62 : vector<8x16xf32>
      %64 = arith.truncf %63 : vector<8x16xf32> to vector<8x16xbf16>
      %c0_17 = arith.constant 0 : index
      %c0_18 = arith.constant 0 : index
      %65 = vector.load %arg7[%c0_17, %c0_18] : memref<8x16xbf16, #tpu.memory_space<vmem>>, vector<8x16xbf16>
      tpu.vector_store %arg7[%c0_17, %c0_18], %64 {strides = array<i32>} : memref<8x16xbf16, #tpu.memory_space<vmem>>, vector<8x16xbf16>,
    } else {
    }
    %c0 = arith.constant 0 : index
    %c0_1 = arith.constant 0 : index
    %c0_2 = arith.constant 0 : index
    %3 = vector.load %arg4[%c0, %c0_1, %c0_2] : memref<1x1x128xi32, #tpu.memory_space<vmem>>, vector<1x1x128xi32>
    %4 = vector.shape_cast %3 : vector<1x1x128xi32> to vector<1x128xi32>
    %5 = tpu.iota {dimensions = array<i32: 0>} : vector<16x128xi32>
    %6 = vector.broadcast %4 : vector<1x128xi32> to vector<16x128xi32>
    %7 = arith.cmpi eq, %5, %6 : vector<16x128xi32>
    %8 = arith.extui %7 : vector<16x128xi1> to vector<16x128xi32>
    %9 = arith.sitofp %8 : vector<16x128xi32> to vector<16x128xf32>
    %10 = arith.truncf %9 : vector<16x128xf32> to vector<16x128xbf16>
    %c0_3 = arith.constant 0 : index
    %c0_4 = arith.constant 0 : index
    %11 = vector.load %arg7[%c0_3, %c0_4] : memref<8x16xbf16, #tpu.memory_space<vmem>>, vector<8x16xbf16>
    %cst = arith.constant dense<0.000000e+00> : vector<8x128xf32>
    %12 = tpu.matmul %11, %10, %cst {dimension_numbers = #tpu.dot_dimension_numbers<[1], [0], [0], [1], [0, 0, 1, 1], [], []>} : vector<8x16xbf16>, vector<16x128xbf16>, vector<8x128xf32> -> vector<8x128xf32>
    %13 = vector.extract_strided_slice %12 {offsets = [0, 0], sizes = [8, 16], strides = [1, 1]} : vector<8x128xf32> to vector<8x16xf32>
    %14 = vector.extract_strided_slice %12 {offsets = [0, 16], sizes = [8, 16], strides = [1, 1]} : vector<8x128xf32> to vector<8x16xf32>
    %15 = arith.maximumf %13, %14 : vector<8x16xf32>
    %16 = vector.extract_strided_slice %12 {offsets = [0, 32], sizes = [8, 16], strides = [1, 1]} : vector<8x128xf32> to vector<8x16xf32>
    %17 = arith.maximumf %15, %16 : vector<8x16xf32>
    %18 = vector.extract_strided_slice %12 {offsets = [0, 48], sizes = [8, 16], strides = [1, 1]} : vector<8x128xf32> to vector<8x16xf32>
    %19 = arith.maximumf %17, %18 : vector<8x16xf32>
    %20 = vector.extract_strided_slice %12 {offsets = [0, 64], sizes = [8, 16], strides = [1, 1]} : vector<8x128xf32> to vector<8x16xf32>
    %21 = arith.maximumf %19, %20 : vector<8x16xf32>
    %22 = vector.extract_strided_slice %12 {offsets = [0, 80], sizes = [8, 16], strides = [1, 1]} : vector<8x128xf32> to vector<8x16xf32>
    %23 = arith.maximumf %21, %22 : vector<8x16xf32>
    %24 = vector.extract_strided_slice %12 {offsets = [0, 96], sizes = [8, 16], strides = [1, 1]} : vector<8x128xf32> to vector<8x16xf32>
    %25 = arith.maximumf %23, %24 : vector<8x16xf32>
    %26 = vector.extract_strided_slice %12 {offsets = [0, 112], sizes = [8, 16], strides = [1, 1]} : vector<8x128xf32> to vector<8x16xf32>
    %27 = arith.maximumf %25, %26 : vector<8x16xf32>
    %cst_5 = arith.constant 1.250000e-01 : f32
    %28 = vector.broadcast %cst_5 : f32 to vector<8x16xf32>
    %29 = arith.mulf %27, %28 : vector<8x16xf32>
    %c0_6 = arith.constant 0 : index
    %c0_7 = arith.constant 0 : index
    %30 = vector.load %arg5[%c0_6, %c0_7] : memref<8x1xf32, #tpu.memory_space<vmem>>, vector<8x1xf32>
    %31 = vector.broadcast %30 : vector<8x1xf32> to vector<8x16xf32>
    %32 = arith.addf %29, %31 : vector<8x16xf32>
    %c0_8 = arith.constant 0 : index
    %c0_9 = arith.constant 0 : index
    %c0_10 = arith.constant 0 : index
    %33 = vector.load %arg6[%c0_8, %c0_9, %c0_10] : memref<1x8x16xf32, #tpu.memory_space<vmem>>, vector<1x8x16xf32>
    %34 = vector.shape_cast %33 : vector<1x8x16xf32> to vector<8x16xf32>
    %35 = vector.shape_cast %32 : vector<8x16xf32> to vector<1x8x16xf32>
    tpu.vector_store %arg6[%c0_8, %c0_9, %c0_10], %35 {strides = array<i32>} : memref<1x8x16xf32, #tpu.memory_space<vmem>>, vector<1x8x16xf32>,
    return
  }
  func.func @transform_0(%arg0: i32, %arg1: i32) -> (i32, i32, i32) {
    %c0_i32 = arith.constant 0 : i32
    %c0_i32_0 = arith.constant 0 : i32
    %c0_i32_1 = arith.constant 0 : i32
    return %arg0, %c0_i32, %c0_i32_0 : i32, i32, i32
  }
  func.func @transform_1(%arg0: i32, %arg1: i32) -> (i32, i32) {
    %c0_i32 = arith.constant 0 : i32
    %c0_i32_0 = arith.constant 0 : i32
    %c0_i32_1 = arith.constant 0 : i32
    return %c0_i32, %c0_i32_0 : i32, i32
  }
  func.func @transform_2(%arg0: i32, %arg1: i32) -> (i32, i32, i32) {
    %c0_i32 = arith.constant 0 : i32
    %c0_i32_0 = arith.constant 0 : i32
    return %arg0, %c0_i32, %arg1 : i32, i32, i32
  }
  func.func @transform_3(%arg0: i32, %arg1: i32) -> (i32, i32) {
    %c0_i32 = arith.constant 0 : i32
    %c0_i32_0 = arith.constant 0 : i32
    %c0_i32_1 = arith.constant 0 : i32
    return %c0_i32, %c0_i32_0 : i32, i32
  }
  func.func @transform_4(%arg0: i32, %arg1: i32) -> (i32, i32, i32) {
    %c0_i32 = arith.constant 0 : i32
    %c0_i32_0 = arith.constant 0 : i32
    return %arg0, %c0_i32, %arg1 : i32, i32, i32
  }
}

</mosaic_0001>

<bundles_post_ra>
// kernel: tpu_custom_call.1
= control target key start
LH: loop header
LB: loop body
LE: loop exit
PB: predicated region body
PF: predicated region fallthrough
CT: control target
= control target key end

     0   :  { %9 = vsyncpa [#allocation4], 0  ;;  %s750_s0 = inlined_call_operand.vmem [shape: f32[2,4,16], index: 0, kind: input, shape index: {}]   ;;  %s751_s1 = inlined_call_operand.vmem [shape: f32[8,4], index: 1, kind: input, shape index: {}]   ;;  %s752_s2 = inlined_call_operand.vmem [shape: s32[2,1,128], index: 2, kind: input, shape index: {}]   ;;  %s753_s3 = inlined_call_operand.vmem [shape: f32[8,1], index: 3, kind: input, shape index: {}]   ;;  %s754_s4 = inlined_call_operand.hbm [shape: f32[2,8,16], index: 4, kind: output, shape index: {}]  }
   0x1   :  { %11 = vsyncpa [#allocation4 + $0x1], 0  ;;  %s642_s15 = smov 0   ;;  %s644_s16 = smov 0  }
   0x2   :  { %s646_s17 = smov 0   ;;  %s648_s18 = smov 0  }
   0x3   :  { %s650_s19 = smov 0   ;;  %s652_s20 = smov 0  }
   0x4 LB: > { %s436_s21 = sadd.s32 4294967295, %s603_s20   ;;  %s437_s22 = sadd.s32 4294967294, %s603_s20   ;;  %s603_s20 = sphi %s652_s20, %s17_s20   ;;  %s599_s19 = sphi %s650_s19, %s761_s19   ;;  %s595_s18 = sphi %s648_s18, %s760_s18   ;;  %s591_s17 = sphi %s646_s17, %s759_s17   ;;  %s587_s16 = sphi %s644_s16, %s758_s16   ;;  %s583_s15 = sphi %s642_s15, %s757_s15  }
   0x5   : > { %s29_s23 = sadd.s32 1, %s599_s19  ;;  %s134_s24 = sadd.s32 1, %s591_s17 }
   0x6   : > { %p31_p0 = scmp.ge.s32.totalorder %s29_s23, 2  ;;  %p144_p1 = scmp.ne.s32.totalorder %s591_s17, %s587_s16 }
   0x7   : > { %p145_p2 = scmp.eq.s32.totalorder %s436_s21, 1  ;;  %p150_p3 = scmp.ne.s32.totalorder %s587_s16, %s583_s15 }
   0x8   : > { %s763_s23 = smov (%p31_p0, %s29_s23), 0  ;;  %p151_p5 = scmp.eq.s32.totalorder %s437_s22, 1 }
   0x9   : > { %p682_p4 = por %p145_p2, %p144_p1  ;;  %s129_s26 = ssub.s32 %s599_s19, %s763_s23 }
   0xa   : > { %p440_p6 = scmp.ge.s32.totalorder %s603_s20, 1  ;;  %p132_p7 = scmp.eq.s32.totalorder %s129_s26, 0 }
   0xb   : > { %p689_p8 = por %p151_p5, %p150_p3  ;;  %p191_p9 = scmp.lt.s32.totalorder %s603_s20, 3 }
   0xc   : > { %s695_s28 = scalar_select %p132_p7, %s591_s17, %s134_s24  }
   0xd   : > { %p192_p10 = pnand %p440_p6, %p191_p9 }
   0xe   : > { %p222_p11 = scmp.lt.s32.totalorder (!%p192_p10), %s595_s18, 1  ;;  %s610_s13 = smov (!%p192_p10), 48  }
   0xf   : > { %195 = sbr.rel (%p192_p10) target bundleno = 426 (0x1aa), region = 36  ;;  %s611_s14 = smov (!%p192_p10), 80  }
  0x10   : > { %s612_s21 = smov (!%p192_p10), 112   ;;  %s613_s26 = smov (!%p192_p10), 32  }
  0x11   : > { %s614_s29 = smov (!%p192_p10), 96   ;;  %s615_s30 = smov (!%p192_p10), 64  }
  0x12   : > { %s219_s6 = sand.u32 (!%p192_p10), 1, %s587_s16  }
  0x13   : > { %s441_s7 = sshll.u32 (!%p192_p10), %s219_s6, 3 }
  0x14   : > { %v238_v0 = vld [vmem:[%s751_s1] sm:$0xff]  ;;  %v605_v1 = vmov 0   ;;  %v606_v2 = vmov 2   ;;  %s223_s5 = scalar_select %p222_p11, %s595_s18, 1  ;;  %v607_v3 = vmov 1   ;;  %v608_v4 = vmov 3  }
  0x15   : > { %519 = vset.pattern.permute.xlu0 %v605_v1  ;;  %521 = vset.pattern.permute.xlu1 %v606_v2  ;;  %v272_v5 = vlaneseq  ;;  %v609_v9 = vmov 1.0|1.0   ;;  %vm269_vm3 = vcmask 125952   ;;  %vm284_vm4 = vcmask 130048   ;;  %v331_v30 = vld [vmem:[%s753_s3] sm:$0xff] }
  0x16   : > { %241 = vperm.xlu0 %519, %v238_v0   ;;  %254 = vperm.xlu1 %521, %v238_v0   ;;  %s231_s8 = scalar_lea.vmem %s752_s2, %s223_s5  ;;  %s442_s9 = sshll.u32 %s223_s5, 2 }
  0x17   : > { %v273_v6 = vshrl.u32 %v272_v5, 7  ;;  %v524_v7 = vld [vmem:[%s231_s8] ss:$0 sm:$0xff]  ;;  %s225_s12 = scalar_lea.vmem %s750_s0, %s442_s9  ;;  %s616_s5 = smov 16  }
  0x18   : > { %v237_v12 = vld [vmem:[%s225_s12] sm:$0xf]  ;;  %s449_s8 = sshll.u32 %s595_s18, 3  ;;  %s221_s12 = scalar_lea.vmem [#allocation3], %s441_s7 }
  0x19   : > { %v274_v8 = vadd.s32 8, %v273_v6  ;;  %vm276_vm0 = vcmp.eq.s32.totalorder %v273_v6, %v524_v7  ;;  %v244_v13 = vperm.slane %v237_v12, 0  ;;  %v250_v14 = vperm.slane %v237_v12, 1  ;;  %s351_s11 = scalar_lea.hbm %s754_s4, %s449_s8  ;;  %s340_s18 = scalar_lea.sflag [#allocation4], %s219_s6 }
  0x1a   : > { %v257_v15 = vperm.slane %v237_v12, 2  ;;  %v264_v16 = vperm.slane %v237_v12, 3 }
  0x1b   : > { %vm277_vm1 = vcmp.eq.s32.totalorder %v274_v8, %v524_v7 }
  0x1c   : > { %vm445_vm2 = vmpackc.low %vm277_vm1, %vm276_vm0 }
  0x1d   : > { %446 = vmatpush.bf16.msk.msra.mxu0 %vm445_vm2, %v609_v9 }
  0x1e   : > { %520 = vset.pattern.permute.xlu0 %v607_v3  ;;  %522 = vset.pattern.permute.xlu1 %v608_v4 }
  0x1f   : > { %247 = vperm.xlu0 %520, %v238_v0   ;;  %261 = vperm.xlu1 %522, %v238_v0  }
  0x27   : > { %523 = vset.pattern.permute.xlu0 %v605_v1 }
  0x88   : > { %v242_v10 = vpop.permute.xlu0 %241  ;;  %v255_v11 = vpop.permute.xlu1 %254 }
  0x89   : > { %v245_v19 = vmul.f32 %v244_v13, %v242_v10  ;;  %v258_v21 = vmul.f32 %v257_v15, %v255_v11 }
  0x91   : > { %v248_v17 = vpop.permute.xlu0 %247  ;;  %v262_v18 = vpop.permute.xlu1 %261 }
  0x92   : > { %v251_v20 = vmul.f32 %v250_v14, %v248_v17  ;;  %v265_v23 = vmul.f32 %v264_v16, %v262_v18 }
  0x94   : > { %v252_v22 = vadd.f32 %v251_v20, %v245_v19 }
  0x96   : > { %v259_v24 = vadd.f32 %v258_v21, %v252_v22 }
  0x98   : > { %v266_v25 = vadd.f32 %v265_v23, %v259_v24 }
  0x9a   : > { %v267_v26 = vmax.f32 %v266_v25, 0.0 }
  0x9c   : > { %v268_v27 = vpack.c.bf16 %v267_v26, %v267_v26 }
  0x9e   : > { %270 = vst.msk [vmem:[#allocation2] sm:$0xf] %vm269_vm3, %v268_v27 }
  0xa5   : > { %v283_v28 = vld [vmem:[#allocation2] sm:$0xf] }
  0xa6   : > { %447 = vmatmul.msk.bf16.vlgmr.msra.gmra.mxu0 %vm284_vm4, %v283_v28 }
 0x123   : > { %v297_v29 = vpop.f32.mrf.mxu0 }
 0x124   : > { %318 = vrot.lane.b32.xlu0 %v297_v29, %s610_s13  ;;  %310 = vrot.lane.b32.xlu1 %v297_v29, %s611_s14  ;;  %s353_s13 = sshll.u32 %s221_s12, 4  ;;  %s355_s14 = sshll.u32 %s351_s11, 4  ;;  %s354_s13 = int_to_ptr.vmem [resolvable:$true] %s353_s13  ;;  %s356_s14 = int_to_ptr.hbm [resolvable:$true] %s355_s14 }
 0x125   : > { %302 = vrot.lane.b32.xlu2 %v297_v29, %s612_s21  ;;  %s539_s21 = sshra.s32 %s356_s14, 4  ;;  %s540_s21 = int_to_ptr.hbm [resolvable:$true] %s539_s21 }
 0x126   : > { %s541_s22 = scalar_lea.hbm %s540_s21, 8  ;;  %p546_p1 = scmp.lt.s32.totalorder %s540_s21, %s754_s4 }
 0x127   : > { %p542_p12 = scmp.ne.s32.totalorder %s540_s21, %s541_s22 }
 0x129   : > { %p543_p13 = pnand %p542_p12, %p682_p4 }
 0x12b   : > { %v299_v31 = vpop.f32.mrf.mxu0  ;;  %p544_p0 = pneg %p543_p13 }
 0x12c   : > { %322 = vrot.lane.b32.xlu1 %v297_v29, %s613_s26  ;;  %334 = vperm.xlu0 %523, %v331_v30  }
 0x12d   : > { %306 = vrot.lane.b32.xlu2 %v297_v29, %s614_s29  ;;  %s545_s29 = scalar_lea.hbm %s754_s4, 16 }
 0x12e   : > { %p547_p2 = scmp.lt.s32.totalorder %s545_s29, %s541_s22 }
 0x130   : > { %p548_p3 = por %p547_p2, %p546_p1 }
 0x132   : > { %p549_p5 = pnand %p548_p3, %p544_p0 }
 0x135   : > { %314 = vrot.lane.b32.xlu2 %v297_v29, %s615_s30 }
 0x13d   : > { %326 = vrot.lane.b32.xlu2 %v297_v29, %s616_s5 }
 0x17f   : > { %v303_v32 = vpop.permute.xlu2 %302 }
 0x180   : > { %v305_v34 = vmax.f32 %v297_v29, %v303_v32 }
 0x187   : > { %v307_v33 = vpop.permute.xlu2 %306 }
 0x188   : > { %v309_v35 = vmax.f32 %v305_v34, %v307_v33 }
 0x18f   : > { %v315_v36 = vpop.permute.xlu2 %314 }
 0x196   : > { %v311_v37 = vpop.permute.xlu1 %310  ;;  %v319_v40 = vpop.permute.xlu0 %318 }
 0x197   : > { %v313_v38 = vmax.f32 %v309_v35, %v311_v37  ;;  %v327_v44 = vpop.permute.xlu2 %326 }
 0x199   : > { %v317_v39 = vmax.f32 %v313_v38, %v315_v36 }
 0x19b   : > { %v321_v41 = vmax.f32 %v317_v39, %v319_v40 }
 0x19e   : > { %v323_v42 = vpop.permute.xlu1 %322  ;;  %v335_v46 = vpop.permute.xlu0 %334 }
 0x19f   : > { %v325_v43 = vmax.f32 %v321_v41, %v323_v42 }
 0x1a1   : > { %v329_v45 = vmax.f32 %v325_v43, %v327_v44 }
 0x1a3   : > { %v330_v47 = vmul.f32 0.125, %v329_v45 }
 0x1a5   : > { %v337_v48 = vadd.f32 %v335_v46, %v330_v47 }
 0x1a7   : > { %338 = vst.msk [vmem:[%s221_s12] sm:$0xff] %vm284_vm4, %v337_v48 }
 0x1a8   : > { %552 = shalt.err (!%p549_p5)
}
 0x1a9   : > { %452 = dma.vmem_to_hbm [thread:$0]  (%p682_p4), %s354_s13, 128, %s356_s14, %s340_s18  }
 0x1aa PF: > { %p458_p6 = scmp.ge.s32.totalorder %s603_s20, 2  ;;  %s367_s6 = sand.u32 1, %s583_s15  }
 0x1ab   : > { %s368_s7 = scalar_lea.sflag [#allocation4], %s367_s6 }
 0x1ac   : > { %p455_p7 = pnand %p458_p6, %p689_p8 }
 0x1ae   : > { %p456_p9 = pneg %p455_p7 }
 0x1b0   : > { %578 = dma.done.wait (%p456_p9), %s368_s7, 128  }
 0x1b1   : > { %580 = vsyncadd (%p456_p9), %s368_s7, 4294967168  ;;  %s17_s20 = sadd.s32 1, %s603_s20   ;;  %s757_s15 = smov %s587_s16 }
 0x1b2   : > { %p14_p10 = scmp.ge.s32.totalorder %s17_s20, 4   ;;  %s758_s16 = smov %s591_s17 }
 0x1b3   : > { %s759_s17 = smov %s695_s28  ;;  %s760_s18 = smov %s599_s19 }
 0x1b4   : > { %s761_s19 = smov %s763_s23  ;;  %16 = sbr.rel (!%p14_p10) target bundleno = 4 (0x4), region = 78 }
 0x1b9   :  { %374 = vsyncpa [#allocation4], 1 }
 0x1ba   :  { %376 = vsyncpa [#allocation4 + $0x1], 1 }

</bundles_post_ra>
